<compile_context>
chip_gen: v7x
topology: tpu7x:2x2x1
jax: 0.10.0
libtpu: 0.0.40
codegen_flags: <defaults>
</compile_context>

<pallas_src>
import functools

import jax
import jax.numpy as jnp
import numpy as np
from jax.experimental import pallas as pl
from jax.experimental.pallas import tpu as pltpu

LATENT_DIM = 32
NUM_CLASSES = 8
DROPOUT_P = 0.3

LANE = 128
SUBLANE = 8
D_PAD = ((LATENT_DIM + LANE - 1) // LANE) * LANE      # 128
C_PAD = ((NUM_CLASSES + LANE - 1) // LANE) * LANE     # 128
# keep iff bits >= threshold  =>  P(keep) = 1 - p  (exact 32-bit threshold, no float uniform)
_KEEP_THRESHOLD = int(round(DROPOUT_P * (1 << 32)))


def _round_up(n, m):
    return ((n + m - 1) // m) * m


# -------------------------- Pallas kernel --------------------------

def _fused_kernel(*refs, training: bool):
    """encoder matmul -> ReLU -> (dropout) -> classifier matmul + bias, all in one kernel."""
    if training:
        x_ref, ew_ref, cw_ref, b_ref, bits_ref, lat_ref, out_ref = refs
    else:
        x_ref, ew_ref, cw_ref, b_ref, lat_ref, out_ref = refs

    # Encoder projection on the MXU: bf16 operands, f32 accumulate.
    lat = jnp.dot(x_ref[...], ew_ref[...], preferred_element_type=jnp.float32)  # [TB, D_PAD]
    # ReLU in f32 on the VPU (v5e has no bf16 VPU).
    lat = jnp.maximum(lat, 0.0)
    lat_ref[...] = lat  # relu(image_latents), lane-dense padded slab

    if training:
        keep = bits_ref[...] >= jnp.uint32(_KEEP_THRESHOLD)
        lat = jnp.where(keep, lat * (1.0 / (1.0 - DROPOUT_P)), 0.0)

    # Classifier: cast only at the matmul boundary (fast MXU path on all generations).
    out_ref[...] = (
        jnp.dot(lat.astype(jnp.bfloat16), cw_ref[...],
                preferred_element_type=jnp.float32)
        + b_ref[...]
    )


# -------------------------- parameter prep (hoisted out of the hot path) --------------------------

def prepare_params(enc_w, cls_w, cls_b):
    """One-time prep: transpose torch Linear weight, zero-pad to lane-dense widths, cast to bf16.

    enc_w: [K, LATENT_DIM]            stub encoder projection
    cls_w: [NUM_CLASSES, LATENT_DIM]  torch nn.Linear layout
    cls_b: [NUM_CLASSES]
    """
    K = enc_w.shape[0]
    ew = jnp.zeros((K, D_PAD), jnp.float32).at[:, :LATENT_DIM].set(
        jnp.asarray(enc_w, jnp.float32))
    cw = jnp.zeros((D_PAD, C_PAD), jnp.float32).at[:LATENT_DIM, :NUM_CLASSES].set(
        jnp.asarray(cls_w, jnp.float32).T)
    b = jnp.zeros((1, C_PAD), jnp.float32).at[0, :NUM_CLASSES].set(
        jnp.asarray(cls_b, jnp.float32))
    return ew.astype(jnp.bfloat16), cw.astype(jnp.bfloat16), b


# -------------------------- forward wrapper --------------------------

def image_latents_classifier_forward(x_nchw, params, *, latents=False,
                                     training=False, rng_key=None,
                                     max_batch_block=512):
    """Fused forward. x_nchw: [B, C, H, W]; params = prepare_params(...)."""
    enc_w_p, cls_w_p, bias_p = params
    B = x_nchw.shape[0]
    K = int(np.prod(x_nchw.shape[1:]))
    x_flat = x_nchw.reshape(B, K).astype(jnp.bfloat16)

    # Batch tile: sublane-aligned, capped so the bf16 x slab stays well under VMEM on v7x.
    TB = min(max_batch_block, _round_up(B, SUBLANE))
    B_pad = _round_up(B, TB)
    if B_pad != B:
        x_flat = jnp.pad(x_flat, ((0, B_pad - B), (0, 0)))
    nb = B_pad // TB

    in_specs = [
        pl.BlockSpec((TB, K), lambda i: (i, 0)),        # activations, tiled over batch
        pl.BlockSpec((K, D_PAD), lambda i: (0, 0)),     # encoder weight, grid-invariant
        pl.BlockSpec((D_PAD, C_PAD), lambda i: (0, 0)), # classifier weight, grid-invariant
        pl.BlockSpec((1, C_PAD), lambda i: (0, 0)),     # bias
    ]
    operands = [x_flat, enc_w_p, cls_w_p, bias_p]

    use_dropout = bool(training) and not latents
    if use_dropout:
        if rng_key is None:
            rng_key = jax.random.PRNGKey(0)
        bits = jax.random.bits(rng_key, (B_pad, D_PAD), dtype=jnp.uint32)
        in_specs.append(pl.BlockSpec((TB, D_PAD), lambda i: (i, 0)))
        operands.append(bits)

    out_shapes = (
        jax.ShapeDtypeStruct((B_pad, D_PAD), jnp.float32),  # relu latents (padded)
        jax.ShapeDtypeStruct((B_pad, C_PAD), jnp.float32),  # logits (padded, lane-dense)
    )
    out_specs = (
        pl.BlockSpec((TB, D_PAD), lambda i: (i, 0)),
        pl.BlockSpec((TB, C_PAD), lambda i: (i, 0)),
    )

    kernel = functools.partial(_fused_kernel, training=use_dropout)
    lat_pad, logits_pad = pl.pallas_call(
        kernel,
        out_shape=out_shapes,
        grid=(nb,),
        in_specs=in_specs,
        out_specs=out_specs,
        compiler_params=pltpu.CompilerParams(
            dimension_semantics=("parallel",)),   # batch axis -> both TCs on v7x
    )(*operands)

    if latents:
        return lat_pad[:B, :LATENT_DIM]
    return logits_pad[:B, :NUM_CLASSES]


# -------------------------- main --------------------------

if __name__ == "__main__":
    key = jax.random.PRNGKey(0)
    k_img, k_enc, k_w, k_b, k_drop = jax.random.split(key, 5)

    B, C_in, H, W = 2, 4, 16, 16                     # small NCHW "CT volume slice" stand-in
    x = jax.random.normal(k_img, (B, C_in, H, W), dtype=jnp.float32)

    K = C_in * H * W
    # TODO(synk): trained_model is an external pretrained CT-CLIP visual encoder; stubbed
    # as a flatten + linear projection whose matmul is fused into the Pallas kernel.
    enc_w = jax.random.normal(k_enc, (K, LATENT_DIM), jnp.float32) * 0.02
    cls_w = jax.random.normal(k_w, (NUM_CLASSES, LATENT_DIM), jnp.float32) * 0.1  # torch [C, D]
    cls_b = jax.random.normal(k_b, (NUM_CLASSES,), jnp.float32) * 0.1

    params = prepare_params(enc_w, cls_w, cls_b)     # hoisted one-time prep

    # eval-mode forward (the inference path of this module)
    logits = jax.block_until_ready(
        image_latents_classifier_forward(x, params, latents=False, training=False))
    # latents=True path
    lat_out = jax.block_until_ready(
        image_latents_classifier_forward(x, params, latents=True))
    # training-mode dropout path (stochastic; just exercised)
    logits_train = jax.block_until_ready(
        image_latents_classifier_forward(x, params, training=True, rng_key=k_drop))

    # --- reference checks ---
    x_flat = x.reshape(B, K)

    # Tight check vs a reference that uses the same bf16 MXU operands / f32 accumulation.
    ref_lat_bf16 = jnp.maximum(
        jnp.dot(x_flat.astype(jnp.bfloat16), enc_w.astype(jnp.bfloat16),
                preferred_element_type=jnp.float32), 0.0)
    np.testing.assert_allclose(np.asarray(lat_out), np.asarray(ref_lat_bf16),
                               rtol=1e-4, atol=1e-4)

    # Semantics check vs the full-f32 PyTorch math (relu -> identity dropout -> x @ W^T + b);
    # tolerance covers the deliberate bf16 cast of the MXU operands.
    ref_lat_f32 = jnp.maximum(x_flat @ enc_w, 0.0)
    ref_logits_f32 = ref_lat_f32 @ cls_w.T + cls_b
    np.testing.assert_allclose(np.asarray(logits), np.asarray(ref_logits_f32),
                               rtol=3e-2, atol=3e-2)

    assert logits.shape == (B, NUM_CLASSES)
    assert lat_out.shape == (B, LATENT_DIM)
    assert logits_train.shape == (B, NUM_CLASSES)

    print("KERNEL_OK")
</pallas_src>

<mosaic_0001>
module attributes {stable_mosaic.version = 11 : i64} {
  func.func @_fused_kernel(%arg0: i32, %arg1: memref<8x1024xbf16, #tpu.memory_space<vmem>>, %arg2: memref<1024x128xbf16, #tpu.memory_space<vmem>>, %arg3: memref<128x128xbf16, #tpu.memory_space<vmem>>, %arg4: memref<1x128xf32, #tpu.memory_space<vmem>>, %arg5: memref<8x128xf32, #tpu.memory_space<vmem>>, %arg6: memref<8x128xf32, #tpu.memory_space<vmem>>) attributes {dimension_semantics = [#tpu.dimension_semantics<parallel>], iteration_bounds = array<i64: 1>, scalar_prefetch = 0 : i64, scratch_operands = 0 : i64, tpu.core_type = #tpu.core_type<tc>, window_params = [{transform_indices = @transform_0, window_bounds = array<i64: 8, 1024>}, {pipeline_mode = #tpu.pipeline_mode<synchronous>, transform_indices = @transform_1, window_bounds = array<i64: 1024, 128>}, {pipeline_mode = #tpu.pipeline_mode<synchronous>, transform_indices = @transform_2, window_bounds = array<i64: 128, 128>}, {pipeline_mode = #tpu.pipeline_mode<synchronous>, transform_indices = @transform_3, window_bounds = array<i64: 1, 128>}, {transform_indices = @transform_4, window_bounds = array<i64: 8, 128>}, {transform_indices = @transform_5, window_bounds = array<i64: 8, 128>}]} {
    %c0 = arith.constant 0 : index
    %c0_0 = arith.constant 0 : index
    %0 = vector.load %arg1[%c0, %c0_0] : memref<8x1024xbf16, #tpu.memory_space<vmem>>, vector<8x1024xbf16>
    %c0_1 = arith.constant 0 : index
    %c0_2 = arith.constant 0 : index
    %1 = vector.load %arg2[%c0_1, %c0_2] : memref<1024x128xbf16, #tpu.memory_space<vmem>>, vector<1024x128xbf16>
    %cst = arith.constant dense<0.000000e+00> : vector<8x128xf32>
    %2 = tpu.matmul %0, %1, %cst {dimension_numbers = #tpu.dot_dimension_numbers<[1], [0], [0], [1], [0, 0, 1, 1], [], []>} : vector<8x1024xbf16>, vector<1024x128xbf16>, vector<8x128xf32> -> vector<8x128xf32>
    %cst_3 = arith.constant 0.000000e+00 : f32
    %3 = vector.broadcast %cst_3 : f32 to vector<8x128xf32>
    %4 = arith.maximumf %2, %3 : vector<8x128xf32>
    %c0_4 = arith.constant 0 : index
    %c0_5 = arith.constant 0 : index
    %5 = vector.load %arg5[%c0_4, %c0_5] : memref<8x128xf32, #tpu.memory_space<vmem>>, vector<8x128xf32>
    tpu.vector_store %arg5[%c0_4, %c0_5], %4 {strides = array<i32>} : memref<8x128xf32, #tpu.memory_space<vmem>>, vector<8x128xf32>,
    %6 = arith.truncf %4 : vector<8x128xf32> to vector<8x128xbf16>
    %c0_6 = arith.constant 0 : index
    %c0_7 = arith.constant 0 : index
    %7 = vector.load %arg3[%c0_6, %c0_7] : memref<128x128xbf16, #tpu.memory_space<vmem>>, vector<128x128xbf16>
    %cst_8 = arith.constant dense<0.000000e+00> : vector<8x128xf32>
    %8 = tpu.matmul %6, %7, %cst_8 {dimension_numbers = #tpu.dot_dimension_numbers<[1], [0], [0], [1], [0, 0, 1, 1], [], []>} : vector<8x128xbf16>, vector<128x128xbf16>, vector<8x128xf32> -> vector<8x128xf32>
    %c0_9 = arith.constant 0 : index
    %c0_10 = arith.constant 0 : index
    %9 = vector.load %arg4[%c0_9, %c0_10] : memref<1x128xf32, #tpu.memory_space<vmem>>, vector<1x128xf32>
    %10 = vector.broadcast %9 : vector<1x128xf32> to vector<8x128xf32>
    %11 = arith.addf %8, %10 : vector<8x128xf32>
    %c0_11 = arith.constant 0 : index
    %c0_12 = arith.constant 0 : index
    %12 = vector.load %arg6[%c0_11, %c0_12] : memref<8x128xf32, #tpu.memory_space<vmem>>, vector<8x128xf32>
    tpu.vector_store %arg6[%c0_11, %c0_12], %11 {strides = array<i32>} : memref<8x128xf32, #tpu.memory_space<vmem>>, vector<8x128xf32>,
    return
  }
  func.func @transform_0(%arg0: i32) -> (i32, i32) {
    %c0_i32 = arith.constant 0 : i32
    %c0_i32_0 = arith.constant 0 : i32
    return %arg0, %c0_i32 : i32, i32
  }
  func.func @transform_1(%arg0: i32) -> (i32, i32) {
    %c0_i32 = arith.constant 0 : i32
    %c0_i32_0 = arith.constant 0 : i32
    %c0_i32_1 = arith.constant 0 : i32
    return %c0_i32, %c0_i32_0 : i32, i32
  }
  func.func @transform_2(%arg0: i32) -> (i32, i32) {
    %c0_i32 = arith.constant 0 : i32
    %c0_i32_0 = arith.constant 0 : i32
    %c0_i32_1 = arith.constant 0 : i32
    return %c0_i32, %c0_i32_0 : i32, i32
  }
  func.func @transform_3(%arg0: i32) -> (i32, i32) {
    %c0_i32 = arith.constant 0 : i32
    %c0_i32_0 = arith.constant 0 : i32
    %c0_i32_1 = arith.constant 0 : i32
    return %c0_i32, %c0_i32_0 : i32, i32
  }
  func.func @transform_4(%arg0: i32) -> (i32, i32) {
    %c0_i32 = arith.constant 0 : i32
    %c0_i32_0 = arith.constant 0 : i32
    return %arg0, %c0_i32 : i32, i32
  }
  func.func @transform_5(%arg0: i32) -> (i32, i32) {
    %c0_i32 = arith.constant 0 : i32
    %c0_i32_0 = arith.constant 0 : i32
    return %arg0, %c0_i32 : i32, i32
  }
}

</mosaic_0001>

<bundles_post_ra>
// kernel: tpu_custom_call.1
= control target key start
LH: loop header
LB: loop body
LE: loop exit
PB: predicated region body
PF: predicated region fallthrough
CT: control target
= control target key end

     0   :  { %11 = vsyncpa [#allocation3], 0  ;;  %s1423_s0 = inlined_call_operand.hbm [shape: bf16[8,1024], index: 0, kind: input, shape index: {}]   ;;  %s1424_s1 = inlined_call_operand.hbm [shape: bf16[1024,128], index: 1, kind: input, shape index: {}]   ;;  %s1425_s2 = inlined_call_operand.hbm [shape: bf16[128,128], index: 2, kind: input, shape index: {}]   ;;  %s1426_s3 = inlined_call_operand.vmem [shape: f32[1,128], index: 3, kind: input, shape index: {}]   ;;  %s1427_s4 = inlined_call_operand.hbm [shape: f32[8,128], index: 4, kind: output, shape index: {0}]   ;;  %s1428_s5 = inlined_call_operand.hbm [shape: f32[8,128], index: 5, kind: output, shape index: {1}]  }
   0x1   :  { %12 = vsyncpa [#allocation6], 0 }
   0x2   :  { %13 = vsyncpa [#allocation4], 0 }
   0x3   :  { %14 = vsyncpa [#allocation10], 0  ;;  %s1315_s18 = smov [#allocation5]   ;;  %s1197_s22 = scalar_lea.hbm %s1424_s1, 8192 }
   0x4   :  { %s30_s19 = sshll.u32 %s1315_s18, 4  ;;  %p1198_p0 = scmp.ne.s32.totalorder %s1424_s1, %s1197_s22  ;;  %s31_s19 = int_to_ptr.vmem [resolvable:$true] %s30_s19 }
   0x5   :  { %p1201_p1 = scmp.lt.u32.totalorder %s1197_s22, %s1424_s1 }
   0x7   :  { %p1203_p2 = pnand %p1201_p1, %p1198_p0 }
   0x9   :  { %1206 = shalt.err (!%p1203_p2)
}
   0xa   :  { %s1207_s27 = scalar_lea.vmem %s31_s19, 8192  ;;  %p1212_p4 = scmp.lt.s32.totalorder %s31_s19, %s31_s19 }
   0xb   :  { %p1208_p3 = scmp.ne.s32.totalorder %s31_s19, %s1207_s27  ;;  %p1213_p5 = scmp.lt.s32.totalorder %s1207_s27, %s1207_s27 }
   0xd   :  { %p1214_p6 = por %p1213_p5, %p1212_p4 }
   0xf   :  { %p1215_p7 = pnand %p1214_p6, %p1208_p3 }
  0x11   :  { %1218 = shalt.err (!%p1215_p7)
}
  0x12   :  { %s1316_s28 = smov 64   ;;  %s1317_s29 = smov 4  }
  0x13   :  { %36 = dma.hbm_to_vmem [thread:$0]  %s1424_s1, 8192, %s31_s19, [#allocation6], %s1316_s28, %s1316_s28, %s1317_s29  }
  0x14   :  { %s1318_s7 = smov [#allocation2]   ;;  %s1319_s9 = smov [#allocation7]  }
  0x15   :  { %s21_s8 = sshll.u32 %s1318_s7, 4  ;;  %s42_s10 = sshll.u32 %s1319_s9, 4  ;;  %s22_s8 = int_to_ptr.vmem [resolvable:$true] %s21_s8  ;;  %s43_s10 = int_to_ptr.vmem [resolvable:$true] %s42_s10 }
  0x16   :  { %s1219_s13 = scalar_lea.hbm %s1423_s0, 512 }
  0x17   :  { %p1220_p8 = scmp.ne.s32.totalorder %s1423_s0, %s1219_s13  ;;  %p1223_p9 = scmp.lt.u32.totalorder %s1219_s13, %s1423_s0 }
  0x19   :  { %p1225_p10 = pnand %p1223_p9, %p1220_p8 }
  0x1b   :  { %1228 = shalt.err (!%p1225_p10)
}
  0x1c   :  { %s1229_s1 = scalar_lea.vmem %s22_s8, 512  ;;  %p1234_p12 = scmp.lt.s32.totalorder %s22_s8, %s22_s8 }
  0x1d   :  { %p1230_p11 = scmp.ne.s32.totalorder %s22_s8, %s1229_s1  ;;  %p1235_p13 = scmp.lt.s32.totalorder %s1229_s1, %s1229_s1 }
  0x1f   :  { %p1236_p0 = por %p1235_p13, %p1234_p12 }
  0x21   :  { %p1237_p1 = pnand %p1236_p0, %p1230_p11 }
  0x23   :  { %1240 = shalt.err (!%p1237_p1)
}
  0x24   :  { %24 = dma.hbm_to_vmem [thread:$0]  %s1423_s0, 512, %s22_s8, [#allocation3]  }
  0x25   :  { %s1241_s22 = scalar_lea.hbm %s1425_s2, 1024 }
  0x26   :  { %p1242_p2 = scmp.ne.s32.totalorder %s1425_s2, %s1241_s22  ;;  %p1245_p3 = scmp.lt.u32.totalorder %s1241_s22, %s1425_s2 }
  0x28   :  { %p1247_p4 = pnand %p1245_p3, %p1242_p2 }
  0x2a   :  { %1250 = shalt.err (!%p1247_p4)
}
  0x2b   :  { %s1251_s27 = scalar_lea.vmem %s43_s10, 1024  ;;  %p1256_p6 = scmp.lt.s32.totalorder %s43_s10, %s43_s10 }
  0x2c   :  { %p1252_p5 = scmp.ne.s32.totalorder %s43_s10, %s1251_s27  ;;  %p1257_p7 = scmp.lt.s32.totalorder %s1251_s27, %s1251_s27 }
  0x2e   :  { %p1258_p8 = por %p1257_p7, %p1256_p6 }
  0x30   :  { %p1259_p9 = pnand %p1258_p8, %p1252_p5 }
  0x32   :  { %1262 = shalt.err (!%p1259_p9)
}
  0x33   :  { %48 = dma.hbm_to_vmem [thread:$0]  %s1425_s2, 1024, %s43_s10, [#allocation6], %s1316_s28, %s1316_s28, %s1317_s29  }
  0x34   :  { %1307 = dma.done.wait [#allocation3], 512  }
  0x35   :  { %1308 = vsyncadd [#allocation3], 4294966784 }
  0x36   :  { %1309 = dma.done.wait [#allocation6], 9216  }
  0x37   :  { %1310 = vsyncadd [#allocation6], 4294958080  ;;  %v1117_v0 = vld [vmem:[#allocation5 + $0x40] sm:$0xff]   ;;  %v1121_v4 = vld [vmem:[#allocation5 + $0x48] sm:$0xff]   ;;  %vm1321_vm0 = vmmov 0   ;;  %s1322_s2 = smov [#allocation8]  }
  0x38   :  { %v1118_v1 = vld [vmem:[#allocation5 + $0xc0] sm:$0xff]   ;;  %991 = vmatprep.subr.bf16.mxu0 %v1117_v0  ;;  %v1122_v5 = vld [vmem:[#allocation5 + $0xc8] sm:$0xff]   ;;  %v1125_v8 = vld [vmem:[#allocation5 + $0x50] sm:$0xff]   ;;  %s886_s28 = sshll.u32 %s1322_s2, 4  ;;  %s887_s28 = int_to_ptr.vmem [resolvable:$true] %s886_s28 }
  0x39   :  { %v1119_v2 = vld [vmem:[#allocation5] sm:$0xff]   ;;  %1013 = vmatprep.subr.bf16.mxu1 %v1118_v1  ;;  %v1123_v6 = vld [vmem:[#allocation5 + $0x8] sm:$0xff]   ;;  %v1126_v9 = vld [vmem:[#allocation5 + $0xd0] sm:$0xff]   ;;  %s1263_s29 = scalar_lea.vmem %s887_s28, 128  ;;  %p1268_p11 = scmp.lt.s32.totalorder %s887_s28, %s887_s28 }
  0x3a   :  { %v1120_v3 = vld [vmem:[#allocation5 + $0x80] sm:$0xff]   ;;  %992 = vmatpush3.bf16.msra.mxu0 %v1119_v2  ;;  %v1124_v7 = vld [vmem:[#allocation5 + $0x88] sm:$0xff]   ;;  %v1127_v10 = vld [vmem:[#allocation5 + $0x10] sm:$0xff]   ;;  %p1264_p10 = scmp.ne.s32.totalorder %s887_s28, %s1263_s29  ;;  %p1269_p12 = scmp.lt.s32.totalorder %s1263_s29, %s1263_s29 }
  0x3b   :  { %1014 = vmatpush3.bf16.msra.mxu1 %v1120_v3  ;;  %993 = vmatprep.subr.bf16.mxu0 %v1121_v4  ;;  %v1128_v11 = vld [vmem:[#allocation5 + $0x90] sm:$0xff]   ;;  %v1129_v12 = vld [vmem:[#allocation5 + $0x58] sm:$0xff]   ;;  %v1133_v16 = vld [vmem:[#allocation5 + $0x60] sm:$0xff]  }
  0x3c   :  { %1015 = vmatprep.subr.bf16.mxu1 %v1122_v5  ;;  %v1130_v13 = vld [vmem:[#allocation5 + $0xd8] sm:$0xff]   ;;  %v1134_v17 = vld [vmem:[#allocation5 + $0xe0] sm:$0xff]   ;;  %v1137_v20 = vld [vmem:[#allocation5 + $0x68] sm:$0xff]   ;;  %p1270_p13 = por %p1269_p12, %p1268_p11 }
  0x3d   :  { %v1131_v14 = vld [vmem:[#allocation5 + $0x18] sm:$0xff]   ;;  %v1135_v18 = vld [vmem:[#allocation5 + $0x20] sm:$0xff]   ;;  %v1138_v21 = vld [vmem:[#allocation5 + $0xe8] sm:$0xff]  }
  0x3e   :  { %994 = vmatpush3.bf16.msra.mxu0 %v1123_v6  ;;  %v1132_v15 = vld [vmem:[#allocation5 + $0x98] sm:$0xff]   ;;  %v1136_v19 = vld [vmem:[#allocation5 + $0xa0] sm:$0xff]   ;;  %v1139_v22 = vld [vmem:[#allocation5 + $0x28] sm:$0xff]   ;;  %p1271_p0 = pnand %p1270_p13, %p1264_p10 }
  0x3f   :  { %1016 = vmatpush3.bf16.msra.mxu1 %v1124_v7  ;;  %995 = vmatprep.subr.bf16.mxu0 %v1125_v8  ;;  %v1140_v23 = vld [vmem:[#allocation5 + $0xa8] sm:$0xff]   ;;  %v1141_v24 = vld [vmem:[#allocation5 + $0x70] sm:$0xff]   ;;  %v1145_v28 = vld [vmem:[#allocation5 + $0x78] sm:$0xff]  }
  0x40   :  { %1017 = vmatprep.subr.bf16.mxu1 %v1126_v9  ;;  %v1142_v25 = vld [vmem:[#allocation5 + $0xf0] sm:$0xff]   ;;  %v1146_v29 = vld [vmem:[#allocation5 + $0xf8] sm:$0xff]   ;;  %v61_v32 = vld [vmem:[#allocation2] sm:$0xff] }
  0x41   :  { %v1143_v26 = vld [vmem:[#allocation5 + $0x30] sm:$0xff]   ;;  %v1147_v30 = vld [vmem:[#allocation5 + $0x38] sm:$0xff]   ;;  %v62_v33 = vld [vmem:[#allocation2 + $0x8] sm:$0xff]  ;;  %v910_v34 = vcombine.low %v61_v32, %v61_v32  ;;  %v911_v35 = vcombine.high %v61_v32, %v61_v32 }
  0x42   :  { %996 = vmatpush3.bf16.msra.mxu0 %v1127_v10  ;;  %v1144_v27 = vld [vmem:[#allocation5 + $0xb0] sm:$0xff]   ;;  %v1148_v31 = vld [vmem:[#allocation5 + $0xb8] sm:$0xff]   ;;  %v912_v36 = vcombine.low %v62_v33, %v62_v33  ;;  %v913_v37 = vcombine.high %v62_v33, %v62_v33  ;;  %v1153_v38 = vld [vmem:[#allocation5 + $0x140] sm:$0xff]  }
  0x43   :  { %1018 = vmatpush3.bf16.msra.mxu1 %v1128_v11  ;;  %997 = vmatprep.subr.bf16.mxu0 %v1129_v12  ;;  %v1154_v39 = vld [vmem:[#allocation5 + $0x1c0] sm:$0xff]   ;;  %v1157_v42 = vld [vmem:[#allocation5 + $0x148] sm:$0xff]   ;;  %v1161_v46 = vld [vmem:[#allocation5 + $0x150] sm:$0xff]  }
  0x44   :  { %1019 = vmatprep.subr.bf16.mxu1 %v1130_v13  ;;  %637 = vmatprep.mubr.bf16.mxu0 %v911_v35  ;;  %v1155_v40 = vld [vmem:[#allocation5 + $0x100] sm:$0xff]   ;;  %v1158_v43 = vld [vmem:[#allocation5 + $0x1c8] sm:$0xff]   ;;  %v1162_v47 = vld [vmem:[#allocation5 + $0x1d0] sm:$0xff]   ;;  %v1320_v13 = vmov 0.0  }
  0x45   :  { %677 = vmatprep.mubr.bf16.mxu1 %v913_v37  ;;  %v1156_v41 = vld [vmem:[#allocation5 + $0x180] sm:$0xff]   ;;  %v1159_v44 = vld [vmem:[#allocation5 + $0x108] sm:$0xff]   ;;  %v1163_v48 = vld [vmem:[#allocation5 + $0x110] sm:$0xff]  }
  0x46   :  { %998 = vmatpush3.bf16.msra.mxu0 %v1131_v14  ;;  %v1160_v45 = vld [vmem:[#allocation5 + $0x188] sm:$0xff]   ;;  %v1164_v49 = vld [vmem:[#allocation5 + $0x190] sm:$0xff]   ;;  %v1165_v50 = vld [vmem:[#allocation5 + $0x158] sm:$0xff]  }
  0x47   :  { %1020 = vmatpush3.bf16.msra.mxu1 %v1132_v15  ;;  %999 = vmatprep.subr.bf16.mxu0 %v1133_v16  ;;  %v1166_v51 = vld [vmem:[#allocation5 + $0x1d8] sm:$0xff]   ;;  %v1169_v54 = vld [vmem:[#allocation5 + $0x160] sm:$0xff]   ;;  %v1173_v58 = vld [vmem:[#allocation5 + $0x168] sm:$0xff]  }
  0x48   :  { %1021 = vmatprep.subr.bf16.mxu1 %v1134_v17  ;;  %v1167_v52 = vld [vmem:[#allocation5 + $0x118] sm:$0xff]   ;;  %v1170_v55 = vld [vmem:[#allocation5 + $0x1e0] sm:$0xff]   ;;  %v1174_v59 = vld [vmem:[#allocation5 + $0x1e8] sm:$0xff]  }
  0x49   :  { %v1168_v53 = vld [vmem:[#allocation5 + $0x198] sm:$0xff]   ;;  %v1171_v56 = vld [vmem:[#allocation5 + $0x120] sm:$0xff]   ;;  %v1175_v60 = vld [vmem:[#allocation5 + $0x128] sm:$0xff]  }
  0x4a   :  { %1000 = vmatpush3.bf16.msra.mxu0 %v1135_v18  ;;  %v1172_v57 = vld [vmem:[#allocation5 + $0x1a0] sm:$0xff]   ;;  %v1176_v61 = vld [vmem:[#allocation5 + $0x1a8] sm:$0xff]   ;;  %v1177_v62 = vld [vmem:[#allocation5 + $0x170] sm:$0xff]  }
  0x4b   :  { %1022 = vmatpush3.bf16.msra.mxu1 %v1136_v19  ;;  %1001 = vmatprep.subr.bf16.mxu0 %v1137_v20  ;;  %v1178_v63 = vld [vmem:[#allocation5 + $0x1f0] sm:$0xff]   ;;  %v1181_v2 = vld [vmem:[#allocation5 + $0x178] sm:$0xff]   ;;  %v1189_v12 = vld [vmem:[#allocation7] sm:$0xff]  }
  0x4c   :  { %1023 = vmatprep.subr.bf16.mxu1 %v1138_v21  ;;  %v1179_v0 = vld [vmem:[#allocation5 + $0x130] sm:$0xff]   ;;  %v1182_v3 = vld [vmem:[#allocation5 + $0x1f8] sm:$0xff]   ;;  %v1190_v14 = vld [vmem:[#allocation7 + $0x8] sm:$0xff]  }
  0x4d   :  { %v1180_v1 = vld [vmem:[#allocation5 + $0x1b0] sm:$0xff]   ;;  %v1183_v4 = vld [vmem:[#allocation5 + $0x138] sm:$0xff]   ;;  %v1193_v17 = vld [vmem:[#allocation7 + $0x20] sm:$0xff]  }
  0x4e   :  { %1002 = vmatpush3.bf16.msra.mxu0 %v1139_v22  ;;  %v1184_v5 = vld [vmem:[#allocation5 + $0x1b8] sm:$0xff]   ;;  %v63_v6 = vld [vmem:[#allocation2 + $0x10] sm:$0xff]  ;;  %v1194_v18 = vld [vmem:[#allocation7 + $0x28] sm:$0xff]  }
  0x4f   :  { %1024 = vmatpush3.bf16.msra.mxu1 %v1140_v23  ;;  %1003 = vmatprep.subr.bf16.mxu0 %v1141_v24  ;;  %v914_v7 = vcombine.low %v63_v6, %v63_v6  ;;  %v915_v8 = vcombine.high %v63_v6, %v63_v6  ;;  %v64_v9 = vld [vmem:[#allocation2 + $0x18] sm:$0xff]  ;;  %v1191_v15 = vld [vmem:[#allocation7 + $0x10] sm:$0xff]  }
  0x50   :  { %1025 = vmatprep.subr.bf16.mxu1 %v1142_v25  ;;  %v916_v10 = vcombine.low %v64_v9, %v64_v9  ;;  %v917_v11 = vcombine.high %v64_v9, %v64_v9  ;;  %v1192_v16 = vld [vmem:[#allocation7 + $0x18] sm:$0xff]   ;;  %v1195_v19 = vld [vmem:[#allocation7 + $0x30] sm:$0xff]  }
  0x51   :  { %v1196_v20 = vld [vmem:[#allocation7 + $0x38] sm:$0xff]  }
  0x52   :  { %1004 = vmatpush3.bf16.msra.mxu0 %v1143_v26 }
  0x53   :  { %1026 = vmatpush3.bf16.msra.mxu1 %v1144_v27  ;;  %1005 = vmatprep.subr.bf16.mxu0 %v1145_v28 }
  0x54   :  { %1027 = vmatprep.subr.bf16.mxu1 %v1146_v29 }
  0x56   :  { %1006 = vmatpush3.bf16.msra.mxu0 %v1147_v30 }
  0x57   :  { %1028 = vmatpush3.bf16.msra.mxu1 %v1148_v31  ;;  %1035 = vmatprep.subr.bf16.mxu0 %v1153_v38 }
  0x58   :  { %1057 = vmatprep.subr.bf16.mxu1 %v1154_v39 }
  0x59   :  { %638 = vmatmul.mubr.bf16.vlgmr.msra.gmra.mrb[0].mxu0 %v910_v34 }
  0x5a   :  { %678 = vmatmul.mubr.bf16.vlgmr.msra.gmra.mrb[0].mxu1 %v912_v36  ;;  %1036 = vmatpush3.bf16.msra.mxu0 %v1155_v40 }
  0x5b   :  { %1058 = vmatpush3.bf16.msra.mxu1 %v1156_v41  ;;  %1037 = vmatprep.subr.bf16.mxu0 %v1157_v42 }
  0x5c   :  { %1059 = vmatprep.subr.bf16.mxu1 %v1158_v43  ;;  %717 = vmatprep.mubr.bf16.mxu0 %v915_v8 }
  0x5d   :  { %757 = vmatprep.mubr.bf16.mxu1 %v917_v11 }
  0x5e   :  { %1038 = vmatpush3.bf16.msra.mxu0 %v1159_v44 }
  0x5f   :  { %1060 = vmatpush3.bf16.msra.mxu1 %v1160_v45  ;;  %1039 = vmatprep.subr.bf16.mxu0 %v1161_v46 }
  0x60   :  { %1061 = vmatprep.subr.bf16.mxu1 %v1162_v47 }
  0x62   :  { %1040 = vmatpush3.bf16.msra.mxu0 %v1163_v48 }
  0x63   :  { %1062 = vmatpush3.bf16.msra.mxu1 %v1164_v49  ;;  %1041 = vmatprep.subr.bf16.mxu0 %v1165_v50 }
  0x64   :  { %1063 = vmatprep.subr.bf16.mxu1 %v1166_v51 }
  0x66   :  { %1042 = vmatpush3.bf16.msra.mxu0 %v1167_v52 }
  0x67   :  { %1064 = vmatpush3.bf16.msra.mxu1 %v1168_v53  ;;  %1043 = vmatprep.subr.bf16.mxu0 %v1169_v54 }
  0x68   :  { %1065 = vmatprep.subr.bf16.mxu1 %v1170_v55 }
  0x6a   :  { %1044 = vmatpush3.bf16.msra.mxu0 %v1171_v56 }
  0x6b   :  { %1066 = vmatpush3.bf16.msra.mxu1 %v1172_v57  ;;  %1045 = vmatprep.subr.bf16.mxu0 %v1173_v58 }
  0x6c   :  { %1067 = vmatprep.subr.bf16.mxu1 %v1174_v59 }
  0x6e   :  { %1046 = vmatpush3.bf16.msra.mxu0 %v1175_v60 }
  0x6f   :  { %1068 = vmatpush3.bf16.msra.mxu1 %v1176_v61  ;;  %1047 = vmatprep.subr.bf16.mxu0 %v1177_v62 }
  0x70   :  { %1069 = vmatprep.subr.bf16.mxu1 %v1178_v63 }
  0x72   :  { %1048 = vmatpush3.bf16.msra.mxu0 %v1179_v0 }
  0x73   :  { %1070 = vmatpush3.bf16.msra.mxu1 %v1180_v1  ;;  %1049 = vmatprep.subr.bf16.mxu0 %v1181_v2 }
  0x74   :  { %1071 = vmatprep.subr.bf16.mxu1 %v1182_v3 }
  0x76   :  { %1050 = vmatpush3.bf16.msra.mxu0 %v1183_v4 }
  0x77   :  { %1072 = vmatpush3.bf16.msra.mxu1 %v1184_v5  ;;  %1088 = vmatprep.subr.bf16.mxu0 %v1320_v13 }
  0x79   :  { %718 = vmatmul.mubr.bf16.vlgmr.msra.gmra.mrb[4].mxu0 %v914_v7 }
  0x7a   :  { %758 = vmatmul.mubr.bf16.vlgmr.msra.gmra.mrb[4].mxu1 %v916_v10  ;;  %1089 = vmatpush3.bf16.msra.mxu0 %v1189_v12 }
  0x7b   :  { %1090 = vmatprep.subr.bf16.mxu0 %v1320_v13  ;;  %1104 = vmatprep.mubr.msk.bf16.mxu0 %vm1321_vm0, %v1320_v13 }
  0x7e   :  { %1091 = vmatpush3.bf16.msra.mxu0 %v1190_v14 }
  0x7f   :  { %1092 = vmatprep.subr.bf16.mxu0 %v1320_v13 }
  0x82   :  { %1093 = vmatpush3.bf16.msra.mxu0 %v1191_v15 }
  0x83   :  { %1094 = vmatprep.subr.bf16.mxu0 %v1320_v13 }
  0x86   :  { %1095 = vmatpush3.bf16.msra.mxu0 %v1192_v16 }
  0x87   :  { %1096 = vmatprep.subr.bf16.mxu0 %v1320_v13 }
  0x8a   :  { %1097 = vmatpush3.bf16.msra.mxu0 %v1193_v17 }
  0x8b   :  { %1098 = vmatprep.subr.bf16.mxu0 %v1320_v13 }
  0x8e   :  { %1099 = vmatpush3.bf16.msra.mxu0 %v1194_v18 }
  0x8f   :  { %1100 = vmatprep.subr.bf16.mxu0 %v1320_v13 }
  0x92   :  { %1101 = vmatpush3.bf16.msra.mxu0 %v1195_v19 }
  0x93   :  { %1102 = vmatprep.subr.bf16.mxu0 %v1320_v13 }
  0x96   :  { %1103 = vmatpush3.bf16.msra.mxu0 %v1196_v20 }
 0x12c   :  { %v1007_v21 = vpop.f32.mrb[0].mxu0 }
 0x12d   :  { %v1029_v22 = vpop.f32.mrb[0].mxu1  ;;  %v1008_v23 = vpop.f32.mrb[1].mxu0 }
 0x12e   :  { %v1030_v24 = vpop.f32.mrb[1].mxu1  ;;  %v1009_v25 = vadd.f32 %v1008_v23, %v1007_v21  ;;  %v1010_v27 = vpop.f32.mrb[2].mxu0 }
 0x12f   :  { %v1031_v26 = vadd.f32 %v1030_v24, %v1029_v22  ;;  %v1032_v28 = vpop.f32.mrb[2].mxu1  ;;  %v1011_v29 = vpop.f32.mrb[3].mxu0 }
 0x130   :  { %v1033_v30 = vpop.f32.mrb[3].mxu1 }
 0x131   :  { %v680_v31 = vadd.f32 %v1031_v26, %v1009_v25 }
 0x14c   :  { %v1051_v32 = vpop.f32.mrb[4].mxu0 }
 0x14d   :  { %v1073_v33 = vpop.f32.mrb[4].mxu1  ;;  %v1052_v34 = vpop.f32.mrb[5].mxu0 }
 0x14e   :  { %v1074_v35 = vpop.f32.mrb[5].mxu1  ;;  %v1053_v36 = vadd.f32 %v1052_v34, %v1051_v32  ;;  %v1054_v38 = vpop.f32.mrb[6].mxu0 }
 0x14f   :  { %v1075_v37 = vadd.f32 %v1074_v35, %v1073_v33  ;;  %v1076_v39 = vpop.f32.mrb[6].mxu1  ;;  %v1055_v40 = vpop.f32.mrb[7].mxu0 }
 0x150   :  { %v1077_v41 = vpop.f32.mrb[7].mxu1  ;;  %v720_v42 = vadd.f32 %v1053_v36, %v680_v31 }
 0x152   :  { %v760_v43 = vadd.f32 %v1075_v37, %v720_v42 }
 0x154   :  { %v765_v44 = vmax.f32 %v760_v43, 0.0 }
 0x156   :  { %v767_v45 = vpack.c.bf16 %v765_v44, %v765_v44  ;;  %766 = vst [vmem:[#allocation8] sm:$0xff] %v765_v44 }
 0x158   :  { %1105 = vmatmul.mubr.bf16.vlgmr.msra.gmra.mrb[8].mxu0 %v767_v45 }
 0x159   :  { %1274 = shalt.err (!%p1271_p0)
}
 0x15a   :  { %s1275_s8 = scalar_lea.hbm %s1427_s4, 128 }
 0x15b   :  { %p1276_p1 = scmp.ne.s32.totalorder %s1427_s4, %s1275_s8  ;;  %p1279_p2 = scmp.lt.u32.totalorder %s1275_s8, %s1427_s4 }
 0x15d   :  { %p1281_p3 = pnand %p1279_p2, %p1276_p1 }
 0x15f   :  { %1284 = shalt.err (!%p1281_p3)
}
 0x160   :  { %889 = dma.vmem_to_hbm [thread:$0]  %s887_s28, 128, %s1427_s4, [#allocation4]   ;;  %v982_v46 = vld [vmem:[%s1426_s3] ss:$0 sm:$0xff] }
 0x161   :  { %s1323_s17 = smov [#allocation9]  }
 0x162   :  { %s896_s1 = sshll.u32 %s1323_s17, 4  ;;  %s897_s1 = int_to_ptr.vmem [resolvable:$true] %s896_s1 }
 0x163   :  { %s1285_s18 = scalar_lea.vmem %s897_s1, 128  ;;  %p1290_p5 = scmp.lt.s32.totalorder %s897_s1, %s897_s1 }
 0x164   :  { %p1286_p4 = scmp.ne.s32.totalorder %s897_s1, %s1285_s18  ;;  %p1291_p6 = scmp.lt.s32.totalorder %s1285_s18, %s1285_s18 }
 0x166   :  { %p1292_p7 = por %p1291_p6, %p1290_p5 }
 0x168   :  { %p1293_p8 = pnand %p1292_p7, %p1286_p4 }
 0x22b   :  { %v873_v47 = vpop.f32.mrb[8].mxu0 }
 0x22c   :  { %v874_v48 = vadd.f32 %v982_v46, %v873_v47  ;;  %v1106_v49 = vpop.f32.mrb[9].mxu0 }
 0x22d   :  { %v876_v50 = vpop.f32.mrb[10].mxu0 }
 0x22e   :  { %879 = vst [vmem:[#allocation9] sm:$0xff] %v874_v48  ;;  %v1107_v51 = vpop.f32.mrb[11].mxu0 }
 0x22f   :  { %1296 = shalt.err (!%p1293_p8)
}
 0x230   :  { %s1297_s3 = scalar_lea.hbm %s1428_s5, 128 }
 0x231   :  { %p1298_p9 = scmp.ne.s32.totalorder %s1428_s5, %s1297_s3  ;;  %p1301_p10 = scmp.lt.u32.totalorder %s1297_s3, %s1428_s5 }
 0x233   :  { %p1303_p11 = pnand %p1301_p10, %p1298_p9 }
 0x235   :  { %1306 = shalt.err (!%p1303_p11)
}
 0x236   :  { %899 = dma.vmem_to_hbm [thread:$0]  %s897_s1, 128, %s1428_s5, [#allocation10]  }
 0x237   :  { %1311 = dma.done.wait [#allocation4], 128  }
 0x238   :  { %1312 = vsyncadd [#allocation4], 4294967168 }
 0x239   :  { %1313 = dma.done.wait [#allocation10], 128  }
 0x23a   :  { %1314 = vsyncadd [#allocation10], 4294967168 }
 0x23b   :  { %906 = vsyncpa [#allocation3], 1 }
 0x23c   :  { %907 = vsyncpa [#allocation6], 1 }
 0x23d   :  { %908 = vsyncpa [#allocation4], 1 }
 0x23e   :  { %909 = vsyncpa [#allocation10], 1 }

</bundles_post_ra>
